<compile_context>
chip_gen: v5e
topology: v5e:2x2
jax: 0.10.0
libtpu: 0.0.40
codegen_flags: <defaults>
</compile_context>

<pallas_src>
import functools

import jax
import jax.numpy as jnp
from jax.experimental import pallas as pl
from jax.experimental.pallas import tpu as pltpu

DROPOUT = 0.05   # inference: identity
BN_EPS = 1e-5
LANE = 128
SUBLANE = 8


def _round_up(n, m):
    return ((n + m - 1) // m) * m


# ---------------------------------------------------------------------------
# Fused kernel: binarize input + all (QuantLinear -> BN -> QuantIdentity) layers
# ---------------------------------------------------------------------------
def _fused_fc_bnn_kernel(*refs, n_layers):
    x_ref, thr_ref = refs[0], refs[1]
    o_ref = refs[-1]
    layer_refs = refs[2:-1]                     # n_layers * (w_t, scale, bias)

    # Preprocess + first QuantIdentity(1-bit), folded into one compare:
    #   sign(2*(x-min)/(max-min) - 1) == sign(x - (min+max)/2)
    h = jnp.where(x_ref[...] >= thr_ref[...], 1.0, -1.0).astype(jnp.bfloat16)

    for li in range(n_layers):
        w_ref = layer_refs[3 * li]              # (K_pad, N_pad) bf16 +/-1, 0 pads
        s_ref = layer_refs[3 * li + 1]          # (1, N_pad) f32 folded BN scale
        b_ref = layer_refs[3 * li + 2]          # (1, N_pad) f32 folded BN bias
        # QuantLinear (bias=False), weights pre-binarized: h @ sign(W).T  (MXU)
        y = jnp.dot(h, w_ref[...], preferred_element_type=jnp.float32)
        # BatchNorm1d folded into affine scale/bias
        y = y * s_ref[...] + b_ref[...]
        if li < n_layers - 1:
            # QuantIdentity(bit_width=1): re-binarize for the next layer
            h = jnp.where(y >= 0.0, 1.0, -1.0).astype(jnp.bfloat16)
        else:
            o_ref[...] = y.astype(o_ref.dtype)


# ---------------------------------------------------------------------------
# Wrapper
# ---------------------------------------------------------------------------
def fc_bnn_forward(x, norm_min, norm_max, kparams, num_classes, *,
                   batch_tile=256):
    B = x.shape[0]
    x_flat = x.reshape(B, -1).astype(jnp.float32)        # x.view(B, -1).float()
    F = x_flat.shape[1]
    F_pad = _round_up(F, LANE)

    # Fold (min, max) into the binarization threshold (min+max)/2.
    thresh = 0.5 * (norm_min.astype(jnp.float32) + norm_max.astype(jnp.float32))
    if F_pad != F:
        # Padded input columns: x pads are 0 and matching weight rows are 0, so
        # whatever they binarize to is inert.
        x_flat = jnp.pad(x_flat, ((0, 0), (0, F_pad - F)))
        thresh = jnp.pad(thresh, (0, F_pad - F))
    thresh = thresh.reshape(1, F_pad)

    # Batch tiling (sublane-aligned); padded rows are sliced away at the end.
    TB = min(_round_up(B, SUBLANE), batch_tile)
    B_pad = _round_up(B, TB)
    if B_pad != B:
        x_flat = jnp.pad(x_flat, ((0, B_pad - B), (0, 0)))
    grid = (B_pad // TB,)

    n_layers = len(kparams)
    N_last = kparams[-1]["w_t"].shape[1]                 # lane-padded

    args = [x_flat, thresh]
    in_specs = [
        pl.BlockSpec((TB, F_pad), lambda i: (i, 0)),
        pl.BlockSpec((1, F_pad), lambda i: (0, 0)),
    ]
    for p in kparams:
        K, N = p["w_t"].shape
        args += [p["w_t"], p["scale"], p["bias"]]
        in_specs += [
            pl.BlockSpec((K, N), lambda i: (0, 0)),      # resident across batch
            pl.BlockSpec((1, N), lambda i: (0, 0)),
            pl.BlockSpec((1, N), lambda i: (0, 0)),
        ]

    kernel = functools.partial(_fused_fc_bnn_kernel, n_layers=n_layers)
    out = pl.pallas_call(
        kernel,
        out_shape=jax.ShapeDtypeStruct((B_pad, N_last), jnp.float32),
        grid=grid,
        in_specs=in_specs,
        out_specs=pl.BlockSpec((TB, N_last), lambda i: (i, 0)),
        compiler_params=pltpu.CompilerParams(
            dimension_semantics=("parallel",)),
    )(*args)
    return out[:B, :num_classes]


# ---------------------------------------------------------------------------
# Parameter init (deterministic, mirrors module __init__ shapes) + preparation
# ---------------------------------------------------------------------------
def init_raw_params(key, num_inputs, num_classes, intermediate_layers):
    dims = [num_inputs] + list(intermediate_layers) + [num_classes]
    params = []
    for din, dout in zip(dims[:-1], dims[1:]):
        key, kw, kg, kb, km, kv = jax.random.split(key, 6)
        # torch.nn.init.uniform_(m.weight.data, -1, 1); torch Linear weight (out, in)
        w = jax.random.uniform(kw, (dout, din), jnp.float32, minval=-1.0, maxval=1.0)
        gamma = jax.random.uniform(kg, (dout,), jnp.float32, minval=0.5, maxval=1.5)
        beta = jax.random.uniform(kb, (dout,), jnp.float32, minval=-0.5, maxval=0.5)
        rmean = jax.random.uniform(km, (dout,), jnp.float32, minval=-0.5, maxval=0.5)
        rvar = jax.random.uniform(kv, (dout,), jnp.float32, minval=0.5, maxval=1.5)
        scale = gamma / jnp.sqrt(rvar + BN_EPS)       # BN folded to affine
        bias = beta - rmean * scale
        params.append(dict(w=w, scale=scale, bias=bias))
    return params


def prepare_params(raw_params, num_inputs):
    """Pre-binarize weights (sign, scale 1), transpose to (in, out), zero-pad
    both dims to 128-lane multiples, cast to bf16; pad folded BN scale/bias
    with zeros so padded output lanes stay zero and padded input rows are inert."""
    kparams = []
    din_pad = _round_up(num_inputs, LANE)
    for p in raw_params:
        dout, din = p["w"].shape
        dout_pad = _round_up(dout, LANE)
        wq = jnp.where(p["w"] >= 0.0, 1.0, -1.0).astype(jnp.float32)   # (out, in)
        w_t = jnp.pad(wq.T, ((0, din_pad - din), (0, dout_pad - dout)))
        scale = jnp.pad(p["scale"], (0, dout_pad - dout)).reshape(1, dout_pad)
        bias = jnp.pad(p["bias"], (0, dout_pad - dout)).reshape(1, dout_pad)
        kparams.append(dict(w_t=w_t.astype(jnp.bfloat16),
                            scale=scale.astype(jnp.float32),
                            bias=bias.astype(jnp.float32)))
        din_pad = dout_pad
    return kparams


# ---------------------------------------------------------------------------
# Pure-JAX reference (mirrors the PyTorch module, eval mode)
# ---------------------------------------------------------------------------
def reference_forward(x, norm_min, norm_max, raw_params):
    B = x.shape[0]
    h = x.reshape(B, -1).astype(jnp.float32)
    h = (h - norm_min) / (norm_max - norm_min)
    h = 2.0 * h - 1.0
    h = jnp.where(h >= 0.0, 1.0, -1.0)
    n = len(raw_params)
    for i, p in enumerate(raw_params):
        wq = jnp.where(p["w"] >= 0.0, 1.0, -1.0)
        y = h @ wq.T
        y = y * p["scale"] + p["bias"]
        h = jnp.where(y >= 0.0, 1.0, -1.0) if i < n - 1 else y
    return h


# ---------------------------------------------------------------------------
if __name__ == "__main__":
    key = jax.random.PRNGKey(0)
    B, C, H, W = 8, 2, 8, 8
    num_inputs = C * H * W                      # 128
    intermediate_layers = (256, 128)
    num_classes = 16

    k_x, k_min, k_rng, k_p = jax.random.split(key, 4)
    x = jax.random.normal(k_x, (B, C, H, W), jnp.float32)
    norm_min = jax.random.uniform(k_min, (num_inputs,), jnp.float32,
                                  minval=-1.0, maxval=0.0)
    norm_max = norm_min + 1.0 + jax.random.uniform(
        k_rng, (num_inputs,), jnp.float32, minval=0.0, maxval=1.0)

    raw_params = init_raw_params(k_p, num_inputs, num_classes, intermediate_layers)
    kparams = prepare_params(raw_params, num_inputs)

    out = fc_bnn_forward(x, norm_min, norm_max, kparams, num_classes)
    jax.block_until_ready(out)

    ref = reference_forward(x, norm_min, norm_max, raw_params)
    assert out.shape == (B, num_classes)
    assert out.dtype == jnp.float32
    assert bool(jnp.all(jnp.isfinite(out)))
    assert bool(jnp.allclose(out, ref, atol=1e-3, rtol=1e-3)), \
        f"max abs err {float(jnp.max(jnp.abs(out - ref)))}"
    print("KERNEL_OK")
</pallas_src>

<mosaic_0001>
module attributes {stable_mosaic.version = 11 : i64} {
  func.func @_fused_fc_bnn_kernel(%arg0: i32, %arg1: memref<8x128xf32, #tpu.memory_space<vmem>>, %arg2: memref<1x128xf32, #tpu.memory_space<vmem>>, %arg3: memref<128x256xbf16, #tpu.memory_space<vmem>>, %arg4: memref<1x256xf32, #tpu.memory_space<vmem>>, %arg5: memref<1x256xf32, #tpu.memory_space<vmem>>, %arg6: memref<256x128xbf16, #tpu.memory_space<vmem>>, %arg7: memref<1x128xf32, #tpu.memory_space<vmem>>, %arg8: memref<1x128xf32, #tpu.memory_space<vmem>>, %arg9: memref<128x128xbf16, #tpu.memory_space<vmem>>, %arg10: memref<1x128xf32, #tpu.memory_space<vmem>>, %arg11: memref<1x128xf32, #tpu.memory_space<vmem>>, %arg12: memref<8x128xf32, #tpu.memory_space<vmem>>) attributes {dimension_semantics = [#tpu.dimension_semantics<parallel>], iteration_bounds = array<i64: 1>, scalar_prefetch = 0 : i64, scratch_operands = 0 : i64, tpu.core_type = #tpu.core_type<tc>, window_params = [{transform_indices = @transform_0, window_bounds = array<i64: 8, 128>}, {pipeline_mode = #tpu.pipeline_mode<synchronous>, transform_indices = @transform_1, window_bounds = array<i64: 1, 128>}, {pipeline_mode = #tpu.pipeline_mode<synchronous>, transform_indices = @transform_2, window_bounds = array<i64: 128, 256>}, {pipeline_mode = #tpu.pipeline_mode<synchronous>, transform_indices = @transform_3, window_bounds = array<i64: 1, 256>}, {pipeline_mode = #tpu.pipeline_mode<synchronous>, transform_indices = @transform_4, window_bounds = array<i64: 1, 256>}, {pipeline_mode = #tpu.pipeline_mode<synchronous>, transform_indices = @transform_5, window_bounds = array<i64: 256, 128>}, {pipeline_mode = #tpu.pipeline_mode<synchronous>, transform_indices = @transform_6, window_bounds = array<i64: 1, 128>}, {pipeline_mode = #tpu.pipeline_mode<synchronous>, transform_indices = @transform_7, window_bounds = array<i64: 1, 128>}, {pipeline_mode = #tpu.pipeline_mode<synchronous>, transform_indices = @transform_8, window_bounds = array<i64: 128, 128>}, {pipeline_mode = #tpu.pipeline_mode<synchronous>, transform_indices = @transform_9, window_bounds = array<i64: 1, 128>}, {pipeline_mode = #tpu.pipeline_mode<synchronous>, transform_indices = @transform_10, window_bounds = array<i64: 1, 128>}, {transform_indices = @transform_11, window_bounds = array<i64: 8, 128>}]} {
    %c0 = arith.constant 0 : index
    %c0_0 = arith.constant 0 : index
    %0 = vector.load %arg1[%c0, %c0_0] : memref<8x128xf32, #tpu.memory_space<vmem>>, vector<8x128xf32>
    %c0_1 = arith.constant 0 : index
    %c0_2 = arith.constant 0 : index
    %1 = vector.load %arg2[%c0_1, %c0_2] : memref<1x128xf32, #tpu.memory_space<vmem>>, vector<1x128xf32>
    %2 = vector.broadcast %1 : vector<1x128xf32> to vector<8x128xf32>
    %3 = arith.cmpf oge, %0, %2 : vector<8x128xf32>
    %cst = arith.constant 1.000000e+00 : f32
    %cst_3 = arith.constant -1.000000e+00 : f32
    %4 = vector.broadcast %cst : f32 to vector<8x128xf32>
    %5 = vector.broadcast %cst_3 : f32 to vector<8x128xf32>
    %6 = arith.select %3, %4, %5 : vector<8x128xi1>, vector<8x128xf32>
    %7 = arith.truncf %6 : vector<8x128xf32> to vector<8x128xbf16>
    %c0_4 = arith.constant 0 : index
    %c0_5 = arith.constant 0 : index
    %8 = vector.load %arg3[%c0_4, %c0_5] : memref<128x256xbf16, #tpu.memory_space<vmem>>, vector<128x256xbf16>
    %cst_6 = arith.constant dense<0.000000e+00> : vector<8x256xf32>
    %9 = tpu.matmul %7, %8, %cst_6 {dimension_numbers = #tpu.dot_dimension_numbers<[1], [0], [0], [1], [0, 0, 1, 1], [], []>} : vector<8x128xbf16>, vector<128x256xbf16>, vector<8x256xf32> -> vector<8x256xf32>
    %c0_7 = arith.constant 0 : index
    %c0_8 = arith.constant 0 : index
    %10 = vector.load %arg4[%c0_7, %c0_8] : memref<1x256xf32, #tpu.memory_space<vmem>>, vector<1x256xf32>
    %11 = vector.broadcast %10 : vector<1x256xf32> to vector<8x256xf32>
    %12 = arith.mulf %9, %11 : vector<8x256xf32>
    %c0_9 = arith.constant 0 : index
    %c0_10 = arith.constant 0 : index
    %13 = vector.load %arg5[%c0_9, %c0_10] : memref<1x256xf32, #tpu.memory_space<vmem>>, vector<1x256xf32>
    %14 = vector.broadcast %13 : vector<1x256xf32> to vector<8x256xf32>
    %15 = arith.addf %12, %14 : vector<8x256xf32>
    %cst_11 = arith.constant 0.000000e+00 : f32
    %16 = vector.broadcast %cst_11 : f32 to vector<8x256xf32>
    %17 = arith.cmpf oge, %15, %16 : vector<8x256xf32>
    %cst_12 = arith.constant 1.000000e+00 : f32
    %cst_13 = arith.constant -1.000000e+00 : f32
    %18 = vector.broadcast %cst_12 : f32 to vector<8x256xf32>
    %19 = vector.broadcast %cst_13 : f32 to vector<8x256xf32>
    %20 = arith.select %17, %18, %19 : vector<8x256xi1>, vector<8x256xf32>
    %21 = arith.truncf %20 : vector<8x256xf32> to vector<8x256xbf16>
    %c0_14 = arith.constant 0 : index
    %c0_15 = arith.constant 0 : index
    %22 = vector.load %arg6[%c0_14, %c0_15] : memref<256x128xbf16, #tpu.memory_space<vmem>>, vector<256x128xbf16>
    %cst_16 = arith.constant dense<0.000000e+00> : vector<8x128xf32>
    %23 = tpu.matmul %21, %22, %cst_16 {dimension_numbers = #tpu.dot_dimension_numbers<[1], [0], [0], [1], [0, 0, 1, 1], [], []>} : vector<8x256xbf16>, vector<256x128xbf16>, vector<8x128xf32> -> vector<8x128xf32>
    %c0_17 = arith.constant 0 : index
    %c0_18 = arith.constant 0 : index
    %24 = vector.load %arg7[%c0_17, %c0_18] : memref<1x128xf32, #tpu.memory_space<vmem>>, vector<1x128xf32>
    %25 = vector.broadcast %24 : vector<1x128xf32> to vector<8x128xf32>
    %26 = arith.mulf %23, %25 : vector<8x128xf32>
    %c0_19 = arith.constant 0 : index
    %c0_20 = arith.constant 0 : index
    %27 = vector.load %arg8[%c0_19, %c0_20] : memref<1x128xf32, #tpu.memory_space<vmem>>, vector<1x128xf32>
    %28 = vector.broadcast %27 : vector<1x128xf32> to vector<8x128xf32>
    %29 = arith.addf %26, %28 : vector<8x128xf32>
    %cst_21 = arith.constant 0.000000e+00 : f32
    %30 = vector.broadcast %cst_21 : f32 to vector<8x128xf32>
    %31 = arith.cmpf oge, %29, %30 : vector<8x128xf32>
    %cst_22 = arith.constant 1.000000e+00 : f32
    %cst_23 = arith.constant -1.000000e+00 : f32
    %32 = vector.broadcast %cst_22 : f32 to vector<8x128xf32>
    %33 = vector.broadcast %cst_23 : f32 to vector<8x128xf32>
    %34 = arith.select %31, %32, %33 : vector<8x128xi1>, vector<8x128xf32>
    %35 = arith.truncf %34 : vector<8x128xf32> to vector<8x128xbf16>
    %c0_24 = arith.constant 0 : index
    %c0_25 = arith.constant 0 : index
    %36 = vector.load %arg9[%c0_24, %c0_25] : memref<128x128xbf16, #tpu.memory_space<vmem>>, vector<128x128xbf16>
    %cst_26 = arith.constant dense<0.000000e+00> : vector<8x128xf32>
    %37 = tpu.matmul %35, %36, %cst_26 {dimension_numbers = #tpu.dot_dimension_numbers<[1], [0], [0], [1], [0, 0, 1, 1], [], []>} : vector<8x128xbf16>, vector<128x128xbf16>, vector<8x128xf32> -> vector<8x128xf32>
    %c0_27 = arith.constant 0 : index
    %c0_28 = arith.constant 0 : index
    %38 = vector.load %arg10[%c0_27, %c0_28] : memref<1x128xf32, #tpu.memory_space<vmem>>, vector<1x128xf32>
    %39 = vector.broadcast %38 : vector<1x128xf32> to vector<8x128xf32>
    %40 = arith.mulf %37, %39 : vector<8x128xf32>
    %c0_29 = arith.constant 0 : index
    %c0_30 = arith.constant 0 : index
    %41 = vector.load %arg11[%c0_29, %c0_30] : memref<1x128xf32, #tpu.memory_space<vmem>>, vector<1x128xf32>
    %42 = vector.broadcast %41 : vector<1x128xf32> to vector<8x128xf32>
    %43 = arith.addf %40, %42 : vector<8x128xf32>
    %c0_31 = arith.constant 0 : index
    %c0_32 = arith.constant 0 : index
    %44 = vector.load %arg12[%c0_31, %c0_32] : memref<8x128xf32, #tpu.memory_space<vmem>>, vector<8x128xf32>
    tpu.vector_store %arg12[%c0_31, %c0_32], %43 {strides = array<i32>} : memref<8x128xf32, #tpu.memory_space<vmem>>, vector<8x128xf32>,
    return
  }
  func.func @transform_0(%arg0: i32) -> (i32, i32) {
    %c0_i32 = arith.constant 0 : i32
    %c0_i32_0 = arith.constant 0 : i32
    return %arg0, %c0_i32 : i32, i32
  }
  func.func @transform_1(%arg0: i32) -> (i32, i32) {
    %c0_i32 = arith.constant 0 : i32
    %c0_i32_0 = arith.constant 0 : i32
    %c0_i32_1 = arith.constant 0 : i32
    return %c0_i32, %c0_i32_0 : i32, i32
  }
  func.func @transform_2(%arg0: i32) -> (i32, i32) {
    %c0_i32 = arith.constant 0 : i32
    %c0_i32_0 = arith.constant 0 : i32
    %c0_i32_1 = arith.constant 0 : i32
    return %c0_i32, %c0_i32_0 : i32, i32
  }
  func.func @transform_3(%arg0: i32) -> (i32, i32) {
    %c0_i32 = arith.constant 0 : i32
    %c0_i32_0 = arith.constant 0 : i32
    %c0_i32_1 = arith.constant 0 : i32
    return %c0_i32, %c0_i32_0 : i32, i32
  }
  func.func @transform_4(%arg0: i32) -> (i32, i32) {
    %c0_i32 = arith.constant 0 : i32
    %c0_i32_0 = arith.constant 0 : i32
    %c0_i32_1 = arith.constant 0 : i32
    return %c0_i32, %c0_i32_0 : i32, i32
  }
  func.func @transform_5(%arg0: i32) -> (i32, i32) {
    %c0_i32 = arith.constant 0 : i32
    %c0_i32_0 = arith.constant 0 : i32
    %c0_i32_1 = arith.constant 0 : i32
    return %c0_i32, %c0_i32_0 : i32, i32
  }
  func.func @transform_6(%arg0: i32) -> (i32, i32) {
    %c0_i32 = arith.constant 0 : i32
    %c0_i32_0 = arith.constant 0 : i32
    %c0_i32_1 = arith.constant 0 : i32
    return %c0_i32, %c0_i32_0 : i32, i32
  }
  func.func @transform_7(%arg0: i32) -> (i32, i32) {
    %c0_i32 = arith.constant 0 : i32
    %c0_i32_0 = arith.constant 0 : i32
    %c0_i32_1 = arith.constant 0 : i32
    return %c0_i32, %c0_i32_0 : i32, i32
  }
  func.func @transform_8(%arg0: i32) -> (i32, i32) {
    %c0_i32 = arith.constant 0 : i32
    %c0_i32_0 = arith.constant 0 : i32
    %c0_i32_1 = arith.constant 0 : i32
    return %c0_i32, %c0_i32_0 : i32, i32
  }
  func.func @transform_9(%arg0: i32) -> (i32, i32) {
    %c0_i32 = arith.constant 0 : i32
    %c0_i32_0 = arith.constant 0 : i32
    %c0_i32_1 = arith.constant 0 : i32
    return %c0_i32, %c0_i32_0 : i32, i32
  }
  func.func @transform_10(%arg0: i32) -> (i32, i32) {
    %c0_i32 = arith.constant 0 : i32
    %c0_i32_0 = arith.constant 0 : i32
    %c0_i32_1 = arith.constant 0 : i32
    return %c0_i32, %c0_i32_0 : i32, i32
  }
  func.func @transform_11(%arg0: i32) -> (i32, i32) {
    %c0_i32 = arith.constant 0 : i32
    %c0_i32_0 = arith.constant 0 : i32
    return %arg0, %c0_i32 : i32, i32
  }
}

</mosaic_0001>

<bundles_post_ra>
// kernel: tpu_custom_call.1
= control target key start
LH: loop header
LB: loop body
LE: loop exit
PB: predicated region body
PF: predicated region fallthrough
CT: control target
= control target key end

     0   :  { %16 = vsyncpa [#allocation3], 0  ;;  %s1061_s0 = inlined_call_operand.hbm [shape: f32[8,128], index: 0, kind: input, shape index: {}]   ;;  %s1062_s1 = inlined_call_operand.hbm [shape: f32[1,128], index: 1, kind: input, shape index: {}]   ;;  %s1063_s2 = inlined_call_operand.hbm [shape: bf16[128,256], index: 2, kind: input, shape index: {}]   ;;  %s1064_s3 = inlined_call_operand.vmem [shape: f32[1,256], index: 3, kind: input, shape index: {}]   ;;  %s1065_s4 = inlined_call_operand.hbm [shape: f32[1,256], index: 4, kind: input, shape index: {}]   ;;  %s1066_s5 = inlined_call_operand.hbm [shape: bf16[256,128], index: 5, kind: input, shape index: {}]   ;;  %s1067_s6 = inlined_call_operand.vmem [shape: f32[1,128], index: 6, kind: input, shape index: {}]   ;;  %s1068_s7 = inlined_call_operand.vmem [shape: f32[1,128], index: 7, kind: input, shape index: {}]   ;;  %s1069_s8 = inlined_call_operand.hbm [shape: bf16[128,128], index: 8, kind: input, shape index: {}]   ;;  %s1070_s9 = inlined_call_operand.vmem [shape: f32[1,128], index: 9, kind: input, shape index: {}]   ;;  %s1071_s10 = inlined_call_operand.vmem [shape: f32[1,128], index: 10, kind: input, shape index: {}]   ;;  %s1072_s11 = inlined_call_operand.hbm [shape: f32[8,128], index: 11, kind: output, shape index: {}]  }
   0x1   :  { %17 = vsyncpa [#allocation6], 0 }
   0x2   :  { %18 = vsyncpa [#allocation9], 0 }
   0x3   :  { %19 = vsyncpa [#allocation12], 0  ;;  %s37_s19 = sshll.u32 %s1062_s1, 4  ;;  %s38_s19 = int_to_ptr.hbm [resolvable:$true] %s37_s19 }
   0x4   :  { %20 = vsyncpa [#allocation4], 0  ;;  %s949_s20 = smov [#allocation5]   ;;  %s63_s24 = sshll.u32 %s1065_s4, 4  ;;  %s64_s24 = int_to_ptr.hbm [resolvable:$true] %s63_s24 }
   0x5   :  { %s39_s21 = sshll.u32 %s949_s20, 4  ;;  %s950_s25 = smov [#allocation8]   ;;  %s40_s21 = int_to_ptr.vmem [resolvable:$true] %s39_s21 }
   0x6   :  { %42 = dma.hbm_to_vmem [thread:$0]  %s38_s19, 16, %s40_s21, [#allocation6]  }
   0x7   :  { %s65_s26 = sshll.u32 %s950_s25, 4  ;;  %s26_s29 = sshll.u32 %s1061_s0, 4  ;;  %s66_s26 = int_to_ptr.vmem [resolvable:$true] %s65_s26  ;;  %s27_s29 = int_to_ptr.hbm [resolvable:$true] %s26_s29 }
   0x8   :  { %68 = dma.hbm_to_vmem [thread:$0]  %s64_s24, 32, %s66_s26, [#allocation9]  }
   0x9   :  { %s47_s12 = sshll.u32 %s1063_s2, 4  ;;  %s951_s13 = smov [#allocation2]   ;;  %s48_s12 = int_to_ptr.hbm [resolvable:$true] %s47_s12 }
   0xa   :  { %s28_s14 = sshll.u32 %s951_s13, 4  ;;  %s952_s4 = smov [#allocation7]   ;;  %s29_s14 = int_to_ptr.vmem [resolvable:$true] %s28_s14 }
   0xb   :  { %31 = dma.hbm_to_vmem [thread:$0]  %s27_s29, 128, %s29_s14, [#allocation3]  }
   0xc   :  { %s49_s15 = sshll.u32 %s952_s4, 4  ;;  %s953_s16 = smov 128   ;;  %s50_s15 = int_to_ptr.vmem [resolvable:$true] %s49_s15 }
   0xd   :  { %s954_s17 = smov 8   ;;  %s73_s19 = sshll.u32 %s1066_s5, 4  ;;  %s74_s19 = int_to_ptr.hbm [resolvable:$true] %s73_s19 }
   0xe   :  { %55 = dma.hbm_to_vmem [thread:$0]  %s48_s12, 2048, %s50_s15, [#allocation6], %s953_s16, %s953_s16, %s954_s17  }
   0xf   :  { %s955_s20 = smov [#allocation10]   ;;  %s90_s23 = sshll.u32 %s1069_s8, 4  ;;  %s91_s23 = int_to_ptr.hbm [resolvable:$true] %s90_s23 }
  0x10   :  { %s75_s21 = sshll.u32 %s955_s20, 4  ;;  %s956_s24 = smov 64   ;;  %s76_s21 = int_to_ptr.vmem [resolvable:$true] %s75_s21 }
  0x11   :  { %s957_s25 = smov 4   ;;  %s958_s26 = smov [#allocation11]  }
  0x12   :  { %81 = dma.hbm_to_vmem [thread:$0]  %s74_s19, 2048, %s76_s21, [#allocation9], %s956_s24, %s956_s24, %s957_s25  }
  0x13   :  { %s92_s27 = sshll.u32 %s958_s26, 4  ;;  %s93_s27 = int_to_ptr.vmem [resolvable:$true] %s92_s27 }
  0x14   :  { %98 = dma.hbm_to_vmem [thread:$0]  %s91_s23, 1024, %s93_s27, [#allocation12], %s956_s24, %s956_s24, %s957_s25  }
  0x15   :  { %939 = dma.done.wait [#allocation3], 128  }
  0x16   :  { %940 = vsyncadd [#allocation3], 4294967168 }
  0x17   :  { %941 = dma.done.wait [#allocation6], 2064  }
  0x18   :  { %942 = vsyncadd [#allocation6], 4294965232 }
  0x19   :  { %943 = dma.done.wait [#allocation9], 2080  }
  0x1a   :  { %944 = vsyncadd [#allocation9], 4294965216 }
  0x1b   :  { %945 = dma.done.wait [#allocation12], 1024  }
  0x1c   :  { %946 = vsyncadd [#allocation12], 4294966272  ;;  %v612_v0 = vld [vmem:[#allocation7 + $0x70] sm:$0xf]  ;;  %v729_v1 = vld [vmem:[#allocation7 + $0x74] sm:$0xf0] }
  0x1d   :  { %v728_v2 = vld [vmem:[#allocation7 + $0x74] sm:$0xf]  ;;  %v613_v3 = vor.u32 %v729_v1, %v612_v0  ;;  %v614_v4 = vld [vmem:[#allocation7 + $0x78] sm:$0xf0]  ;;  %v604_v5 = vld [vmem:[#allocation7 + $0x60] sm:$0xf] }
  0x1e   :  { %v727_v6 = vld [vmem:[#allocation7 + $0x64] sm:$0xf0]  ;;  %v617_v7 = vor.u32 %v728_v2, %v614_v4  ;;  %v726_v8 = vld [vmem:[#allocation7 + $0x64] sm:$0xf]  ;;  %v606_v9 = vld [vmem:[#allocation7 + $0x68] sm:$0xf0] }
  0x1f   :  { %231 = vmatpush.bf16.msra.mxu0 %v613_v3  ;;  %v605_v10 = vor.u32 %v727_v6, %v604_v5  ;;  %v609_v11 = vor.u32 %v726_v8, %v606_v9  ;;  %v596_v12 = vld [vmem:[#allocation7 + $0x50] sm:$0xf]  ;;  %v725_v13 = vld [vmem:[#allocation7 + $0x54] sm:$0xf0]  ;;  %v724_v14 = vld [vmem:[#allocation7 + $0x54] sm:$0xf] }
  0x20   :  { %244 = vmatpush.bf16.msra.mxu1 %v617_v7  ;;  %v598_v15 = vld [vmem:[#allocation7 + $0x58] sm:$0xf0]  ;;  %v597_v16 = vor.u32 %v725_v13, %v596_v12  ;;  %v588_v18 = vld [vmem:[#allocation7 + $0x40] sm:$0xf]  ;;  %v723_v19 = vld [vmem:[#allocation7 + $0x44] sm:$0xf0] }
  0x21   :  { %v601_v17 = vor.u32 %v724_v14, %v598_v15  ;;  %v722_v20 = vld [vmem:[#allocation7 + $0x44] sm:$0xf]  ;;  %v590_v21 = vld [vmem:[#allocation7 + $0x48] sm:$0xf0]  ;;  %v589_v22 = vor.u32 %v723_v19, %v588_v18  ;;  %v737_v23 = vld [vmem:[#allocation10 + $0x38] sm:$0xff]  ;;  %v959_v59 = vmov -1.0  }
  0x22   :  { %v593_v24 = vor.u32 %v722_v20, %v590_v21  ;;  %v580_v25 = vld [vmem:[#allocation7 + $0x30] sm:$0xf]  ;;  %v721_v26 = vld [vmem:[#allocation7 + $0x34] sm:$0xf0]  ;;  %v720_v28 = vld [vmem:[#allocation7 + $0x34] sm:$0xf]  ;;  %407 = vmatpush.bf16.msra.mxu2 %v737_v23 }
  0x23   :  { %232 = vmatpush.bf16.msra.mxu0 %v605_v10  ;;  %v745_v27 = vld [vmem:[#allocation10 + $0x78] sm:$0xff]  ;;  %v736_v30 = vld [vmem:[#allocation10 + $0x30] sm:$0xff]  ;;  %v581_v32 = vor.u32 %v721_v26, %v580_v25  ;;  %v719_v34 = vld [vmem:[#allocation7 + $0x24] sm:$0xf0]  ;;  %s960_s14 = smov [#allocation13]   ;;  %s541_s16 = sshll.u32 %s1072_s11, 4  ;;  %s542_s16 = int_to_ptr.hbm [resolvable:$true] %s541_s16 }
  0x24   :  { %245 = vmatpush.bf16.msra.mxu1 %v609_v11  ;;  %v582_v29 = vld [vmem:[#allocation7 + $0x38] sm:$0xf0]  ;;  %420 = vmatpush.bf16.msra.mxu3 %v745_v27  ;;  %v744_v31 = vld [vmem:[#allocation10 + $0x70] sm:$0xff]  ;;  %v572_v33 = vld [vmem:[#allocation7 + $0x20] sm:$0xf] }
  0x25   :  { %v585_v35 = vor.u32 %v720_v28, %v582_v29  ;;  %v718_v36 = vld [vmem:[#allocation7 + $0x24] sm:$0xf]  ;;  %v574_v37 = vld [vmem:[#allocation7 + $0x28] sm:$0xf0]  ;;  %v573_v40 = vor.u32 %v719_v34, %v572_v33  ;;  %v564_v41 = vld [vmem:[#allocation7 + $0x10] sm:$0xf] }
  0x26   :  { %408 = vmatpush.bf16.msra.mxu2 %v736_v30  ;;  %v735_v38 = vld [vmem:[#allocation10 + $0x28] sm:$0xff]  ;;  %v577_v42 = vor.u32 %v718_v36, %v574_v37  ;;  %v717_v43 = vld [vmem:[#allocation7 + $0x14] sm:$0xf0]  ;;  %v716_v44 = vld [vmem:[#allocation7 + $0x14] sm:$0xf] }
  0x27   :  { %233 = vmatpush.bf16.msra.mxu0 %v597_v16  ;;  %v743_v39 = vld [vmem:[#allocation10 + $0x68] sm:$0xff]  ;;  %v766_v45 = vld [vmem:[#allocation5] ss:$0 sm:$0xff]  ;;  %v127_v47 = vld [vmem:[#allocation2] sm:$0xff]  ;;  %v565_v50 = vor.u32 %v717_v43, %v564_v41 }
  0x28   :  { %246 = vmatpush.bf16.msra.mxu1 %v601_v17  ;;  %421 = vmatpush.bf16.msra.mxu3 %v744_v31  ;;  %v566_v46 = vld [vmem:[#allocation7 + $0x18] sm:$0xf0]  ;;  %v734_v48 = vld [vmem:[#allocation10 + $0x20] sm:$0xff]  ;;  %vm132_vm0 = vcmp.ge.f32.partialorder %v127_v47, %v766_v45  ;;  %v558_v55 = vld [vmem:[#allocation7 + $0x8] sm:$0xf0] }
  0x29   :  { %v742_v49 = vld [vmem:[#allocation10 + $0x60] sm:$0xff]  ;;  %v569_v51 = vor.u32 %v716_v44, %v566_v46  ;;  %v733_v56 = vld [vmem:[#allocation10 + $0x18] sm:$0xff]  ;;  %v133_v60 = vsel %vm132_vm0, 1.0, %v959_v59  ;;  %v732_v62 = vld [vmem:[#allocation10 + $0x10] sm:$0xff] }
  0x2a   :  { %409 = vmatpush.bf16.msra.mxu2 %v735_v38  ;;  %v556_v52 = vld [vmem:[#allocation7] sm:$0xf]  ;;  %v715_v53 = vld [vmem:[#allocation7 + $0x4] sm:$0xf0]  ;;  %v714_v54 = vld [vmem:[#allocation7 + $0x4] sm:$0xf]  ;;  %v134_v63 = vpack.c.bf16 %v133_v60, %v133_v60 }
  0x2b   :  { %234 = vmatpush.bf16.msra.mxu0 %v589_v22  ;;  %v741_v57 = vld [vmem:[#allocation10 + $0x58] sm:$0xff]  ;;  %v557_v58 = vor.u32 %v715_v53, %v556_v52  ;;  %v561_v61 = vor.u32 %v714_v54, %v558_v55  ;;  %v740_v0 = vld [vmem:[#allocation10 + $0x50] sm:$0xff]  ;;  %v731_v1 = vld [vmem:[#allocation10 + $0x8] sm:$0xff] }
  0x2c   :  { %247 = vmatpush.bf16.msra.mxu1 %v593_v24  ;;  %422 = vmatpush.bf16.msra.mxu3 %v743_v39  ;;  %v739_v2 = vld [vmem:[#allocation10 + $0x48] sm:$0xff]  ;;  %v730_v3 = vld [vmem:[#allocation10] sm:$0xff]  ;;  %v753_v5 = vld [vmem:[#allocation11 + $0x38] sm:$0xff] }
  0x2d   :  { %v738_v4 = vld [vmem:[#allocation10 + $0x40] sm:$0xff]  ;;  %v752_v6 = vld [vmem:[#allocation11 + $0x30] sm:$0xff]  ;;  %v751_v7 = vld [vmem:[#allocation11 + $0x28] sm:$0xff] }
  0x2e   :  { %410 = vmatpush.bf16.msra.mxu2 %v734_v48  ;;  %v750_v8 = vld [vmem:[#allocation11 + $0x20] sm:$0xff]  ;;  %v749_v9 = vld [vmem:[#allocation11 + $0x18] sm:$0xff]  ;;  %v257_v10 = vld [vmem:[%s1064_s3] sm:$0x3] }
  0x2f   :  { %235 = vmatpush.bf16.msra.mxu0 %v581_v32  ;;  %v265_v11 = vld [vmem:[#allocation8] sm:$0x3]  ;;  %v259_v12 = vperm.slane %v257_v10, 0  ;;  %v260_v13 = vperm.slane %v257_v10, 1  ;;  %v748_v28 = vld [vmem:[#allocation11 + $0x10] sm:$0xff]  ;;  %v747_v29 = vld [vmem:[#allocation11 + $0x8] sm:$0xff] }
  0x30   :  { %248 = vmatpush.bf16.msra.mxu1 %v585_v35  ;;  %423 = vmatpush.bf16.msra.mxu3 %v742_v49  ;;  %v267_v14 = vperm.slane %v265_v11, 0  ;;  %v268_v16 = vperm.slane %v265_v11, 1  ;;  %v746_v30 = vld [vmem:[#allocation11] sm:$0xff]  ;;  %v767_v32 = vld [vmem:[%s1067_s6] ss:$0 sm:$0xff] }
  0x31   :  { %v768_v35 = vld [vmem:[%s1068_s7] ss:$0 sm:$0xff]  ;;  %s539_s7 = sshll.u32 %s960_s14, 4  ;;  %s540_s7 = int_to_ptr.vmem [resolvable:$true] %s539_s7 }
  0x32   :  { %411 = vmatpush.bf16.msra.mxu2 %v733_v56  ;;  %v770_v43 = vld [vmem:[%s1071_s10] ss:$0 sm:$0xff] }
  0x33   :  { %236 = vmatpush.bf16.msra.mxu0 %v573_v40 }
  0x34   :  { %249 = vmatpush.bf16.msra.mxu1 %v577_v42  ;;  %424 = vmatpush.bf16.msra.mxu3 %v741_v57  ;;  %v769_v42 = vld [vmem:[%s1070_s9] ss:$0 sm:$0xff] }
  0x36   :  { %412 = vmatpush.bf16.msra.mxu2 %v732_v62 }
  0x37   :  { %237 = vmatpush.bf16.msra.mxu0 %v565_v50 }
  0x38   :  { %250 = vmatpush.bf16.msra.mxu1 %v569_v51  ;;  %425 = vmatpush.bf16.msra.mxu3 %v740_v0 }
  0x3a   :  { %413 = vmatpush.bf16.msra.mxu2 %v731_v1 }
  0x3b   :  { %238 = vmatpush.bf16.msra.mxu0 %v557_v58 }
  0x3c   :  { %251 = vmatpush.bf16.msra.mxu1 %v561_v61  ;;  %426 = vmatpush.bf16.msra.mxu3 %v739_v2 }
  0x3e   :  { %239 = vmatmul.bf16.vlgmr.msra.gmra.mxu0 %v134_v63  ;;  %414 = vmatpush.bf16.msra.mxu2 %v730_v3 }
  0x3f   :  { %252 = vmatmul.bf16.vlgmr.msra.gmra.mxu1 %v134_v63  ;;  %510 = vmatpush.bf16.msrb.mxu0 %v753_v5 }
  0x40   :  { %427 = vmatpush.bf16.msra.mxu3 %v738_v4 }
  0x43   :  { %511 = vmatpush.bf16.msrb.mxu0 %v752_v6 }
  0x47   :  { %512 = vmatpush.bf16.msrb.mxu0 %v751_v7 }
  0x4b   :  { %513 = vmatpush.bf16.msrb.mxu0 %v750_v8 }
  0x4f   :  { %514 = vmatpush.bf16.msrb.mxu0 %v749_v9 }
  0x53   :  { %515 = vmatpush.bf16.msrb.mxu0 %v748_v28 }
  0x57   :  { %516 = vmatpush.bf16.msrb.mxu0 %v747_v29 }
  0x5b   :  { %517 = vmatpush.bf16.msrb.mxu0 %v746_v30 }
  0xbb   :  { %v240_v15 = vpop.f32.mrf.mxu0 }
  0xbc   :  { %v263_v17 = vmul.f32 %v259_v12, %v240_v15  ;;  %v253_v18 = vpop.f32.mrf.mxu1 }
  0xbd   :  { %v264_v19 = vmul.f32 %v260_v13, %v253_v18 }
  0xbe   :  { %v271_v20 = vadd.f32 %v267_v14, %v263_v17 }
  0xbf   :  { %v272_v21 = vadd.f32 %v268_v16, %v264_v19 }
  0xc0   :  { %vm273_vm1 = vcmp.ge.f32.partialorder %v271_v20, 0.0 }
  0xc1   :  { %v275_v22 = vsel %vm273_vm1, 1.0, %v959_v59  ;;  %vm274_vm2 = vcmp.ge.f32.partialorder %v272_v21, 0.0 }
  0xc2   :  { %v277_v23 = vpack.c.bf16 %v275_v22, %v275_v22  ;;  %v276_v24 = vsel %vm274_vm2, 1.0, %v959_v59 }
  0xc3   :  { %v242_v25 = vpop.f32.mrf.mxu0  ;;  %v278_v26 = vpack.c.bf16 %v276_v24, %v276_v24 }
  0xc4   :  { %v255_v27 = vpop.f32.mrf.mxu1  ;;  %415 = vmatmul.bf16.vlgmr.msra.gmra.mxu2 %v277_v23 }
  0xc5   :  { %428 = vmatmul.bf16.vlgmr.msra.gmra.mxu3 %v278_v26 }
 0x147   :  { %v416_v31 = vpop.f32.mrf.mxu2 }
 0x148   :  { %v429_v33 = vpop.f32.mrf.mxu3 }
 0x149   :  { %v430_v34 = vadd.f32 %v429_v33, %v416_v31 }
 0x14b   :  { %v437_v36 = vmul.f32 %v767_v32, %v430_v34 }
 0x14d   :  { %v442_v37 = vadd.f32 %v768_v35, %v437_v36 }
 0x14f   :  { %vm443_vm3 = vcmp.ge.f32.partialorder %v442_v37, 0.0  ;;  %v418_v38 = vpop.f32.mrf.mxu2 }
 0x150   :  { %v431_v39 = vpop.f32.mrf.mxu3  ;;  %v444_v40 = vsel %vm443_vm3, 1.0, %v959_v59 }
 0x151   :  { %v445_v41 = vpack.c.bf16 %v444_v40, %v444_v40 }
 0x153   :  { %518 = vmatmul.bf16.vlgmr.msrb.gmra.mxu0 %v445_v41 }
 0x1d0   :  { %v519_v44 = vpop.f32.mrf.mxu0 }
 0x1d1   :  { %v527_v45 = vmul.f32 %v769_v42, %v519_v44 }
 0x1d3   :  { %v532_v46 = vadd.f32 %v770_v43, %v527_v45 }
 0x1d5   :  { %533 = vst [vmem:[#allocation13] sm:$0xff] %v532_v46 }
 0x1d6   :  { %544 = dma.vmem_to_hbm [thread:$0]  %s540_s7, 128, %s542_s16, [#allocation4]  }
 0x1d8   :  { %v521_v47 = vpop.f32.mrf.mxu0 }
 0x1d9   :  { %947 = dma.done.wait [#allocation4], 128  }
 0x1da   :  { %948 = vsyncadd [#allocation4], 4294967168 }
 0x1db   :  { %549 = vsyncpa [#allocation3], 1 }
 0x1dc   :  { %550 = vsyncpa [#allocation6], 1 }
 0x1dd   :  { %551 = vsyncpa [#allocation9], 1 }
 0x1de   :  { %552 = vsyncpa [#allocation12], 1 }
 0x1df   :  { %553 = vsyncpa [#allocation4], 1 }

</bundles_post_ra>
